<compile_context>
chip_gen: v6e
topology: v6e:2x2x1
jax: 0.10.0
libtpu: 0.0.40
codegen_flags: <defaults>
</compile_context>

<pallas_src>
import functools

import jax
import jax.numpy as jnp
import numpy as np
from jax.experimental import pallas as pl
from jax.experimental.pallas import tpu as pltpu


# ----------------------------- Pallas kernel --------------------------------
def msconv_kernel(x_ref, w_ref, pw_ref, o_ref, y_scr, *, gelu_approximate):
    """One grid step = `bt` batch elements, each a full (C, L) slab.

    x_ref : (bt, C, L)  input block (f32)
    w_ref : (2, C, 5)   folded 5-tap depthwise weights; [0]=even out-chans, [1]=odd
    pw_ref: (C, 2C)     pointwise 1x1 weight, columns ordered [even-block | odd-block]
    o_ref : (bt, C, L)  output block
    y_scr : (2C, bt*L)  VMEM scratch: depthwise output packed for ONE batched matmul
    """
    bt, C, L = x_ref.shape

    # ---- hoisted once per grid step (shared by the whole block) -------------
    x3 = x_ref[...]                                    # (bt, C, L)
    x2 = x3.reshape(bt * C, L)                         # free row-major collapse
    lane = jax.lax.broadcasted_iota(jnp.int32, (bt * C, L), 1)

    w_e = w_ref[0]                                     # (C, 5)
    w_o = w_ref[1]
    we_col = [w_e[:, k:k + 1] for k in range(5)]       # (C, 1) per tap
    wo_col = [w_o[:, k:k + 1] for k in range(5)]

    # ---- folded 5-tap depthwise conv, vectorized over the whole block -------
    # (biases dropped: InstanceNorm with no affine cancels per-channel constants)
    y_e = x3 * we_col[2]                               # center tap, (bt, C, L)
    y_o = x3 * wo_col[2]
    for k in (0, 1, 3, 4):
        off = k - 2                                    # tap reads x[..., t + off]
        xs = pltpu.roll(x2, (-off) % L, axis=1)        # XLU lane rotation (2-D)
        if off > 0:
            xs = jnp.where(lane < L - off, xs, 0.0)    # zero the wrapped tail
        else:
            xs = jnp.where(lane >= -off, xs, 0.0)      # zero the wrapped head
        xs3 = xs.reshape(bt, C, L)                     # free view back to 3-D
        y_e = y_e + xs3 * we_col[k]
        y_o = y_o + xs3 * wo_col[k]

    # ---- pack even/odd halves into (2C, bt*L) and run ONE pointwise matmul --
    for b in range(bt):                                # static; bt is kept <= 8
        y_scr[0:C, b * L:(b + 1) * L] = y_e[b]
        y_scr[C:2 * C, b * L:(b + 1) * L] = y_o[b]
    z_all = jnp.dot(pw_ref[...], y_scr[...],
                    preferred_element_type=jnp.float32)    # (C, bt*L) on the MXU
    # (pointwise bias also dropped -- cancelled by InstanceNorm)

    # ---- per batch element: InstanceNorm1d (biased var, eps=1e-5) + GELU ----
    # TODO(synk): switch this tail to lax.fori_loop / a 2nd grid axis if bt > 8.
    for b in range(bt):
        z = z_all[:, b * L:(b + 1) * L]                # static 128-aligned lane slice
        mean = jnp.mean(z, axis=1, keepdims=True)
        zc = z - mean                                  # materialized once, reused
        var = jnp.mean(zc * zc, axis=1, keepdims=True)
        zn = zc * jax.lax.rsqrt(var + 1e-5)
        if gelu_approximate:
            # tanh-GELU: transcendental goes to the (otherwise idle) EUP slot.
            g = 0.5 * zn * (1.0 + jnp.tanh(
                0.7978845608028654 * (zn + 0.044715 * zn * zn * zn)))
        else:
            # exact erf GELU (torch.nn.GELU default).
            g = 0.5 * zn * (1.0 + jax.lax.erf(zn * 0.7071067811865476))
        # Dropout (p=0.2) is identity at inference time.
        o_ref[b] = g.astype(o_ref.dtype)


# ------------------------------ wrapper --------------------------------------
def _const_spec(arr):
    n = arr.ndim
    return pl.BlockSpec(arr.shape, lambda i, n=n: (0,) * n)


def _vmem_capacity_bytes():
    try:
        cap = getattr(pltpu.get_tpu_info(), "vmem_capacity_bytes", None)
        if cap:
            return int(cap)
    except Exception:
        pass
    return 64 * 2 ** 20            # conservative fallback: v7x (64 MiB per TC)


def _pick_batch_block(B, C, L, itemsize, budget_bytes, max_bt=8):
    """Largest divisor of B (capped at max_bt) whose working set fits the budget.
    ~16 block-equivalents live at once: double-buffered in/out, the (2C, bt*L)
    scratch, and the f32 temporaries of the tap / norm stages.  No forced >=2
    grid steps: splitting sub-microsecond steps only adds per-step overhead."""
    best = 1
    for bt in range(1, min(B, max_bt) + 1):
        if B % bt == 0 and 16 * bt * C * L * itemsize <= budget_bytes:
            best = bt
    return best


def msconv_forward(x, kernel_params, *, batch_block=None, gelu_approximate=False):
    B, C, L = x.shape
    cap = _vmem_capacity_bytes()
    bt = batch_block if batch_block is not None else _pick_batch_block(
        B, C, L, x.dtype.itemsize, budget_bytes=cap // 4)
    assert B % bt == 0, "batch_block must divide the batch size"

    block_bytes = bt * C * L * x.dtype.itemsize
    # Never request more than 75% of physical VMEM (v7x: 64 MiB per TensorCore).
    vmem_limit = int(min(0.75 * cap, max(32 * 2 ** 20, 24 * block_bytes)))

    w_k, pw_k = kernel_params
    in_specs = [pl.BlockSpec((bt, C, L), lambda i: (i, 0, 0)),
                _const_spec(w_k), _const_spec(pw_k)]

    kernel = functools.partial(msconv_kernel, gelu_approximate=gelu_approximate)
    return pl.pallas_call(
        kernel,
        out_shape=jax.ShapeDtypeStruct((B, C, L), x.dtype),
        grid_spec=pltpu.PrefetchScalarGridSpec(
            num_scalar_prefetch=0,
            grid=(B // bt,),
            in_specs=in_specs,
            out_specs=pl.BlockSpec((bt, C, L), lambda i: (i, 0, 0)),
            scratch_shapes=[pltpu.VMEM((2 * C, bt * L), jnp.float32)],
        ),
        compiler_params=pltpu.CompilerParams(
            dimension_semantics=("parallel",),
            vmem_limit_bytes=vmem_limit,
        ),
    )(x, w_k, pw_k)


def make_params(dim, key):
    """Deterministic parameters in PyTorch layouts (as in MSConv.__init__)."""
    ks = jax.random.split(key, 8)
    s = 0.2
    dw1_w = s * jax.random.normal(ks[0], (2 * dim, 1, 1), jnp.float32)
    dw1_b = s * jax.random.normal(ks[1], (2 * dim,), jnp.float32)
    dw3_w = s * jax.random.normal(ks[2], (2 * dim, 1, 3), jnp.float32)
    dw3_b = s * jax.random.normal(ks[3], (2 * dim,), jnp.float32)
    dw5_w = s * jax.random.normal(ks[4], (2 * dim, 1, 5), jnp.float32)
    dw5_b = s * jax.random.normal(ks[5], (2 * dim,), jnp.float32)
    pw_w = s * jax.random.normal(ks[6], (dim, 2 * dim, 1), jnp.float32)
    pw_b = s * jax.random.normal(ks[7], (dim,), jnp.float32)
    return dw1_w, dw1_b, dw3_w, dw3_b, dw5_w, dw5_b, pw_w, pw_b


def fold_params(torch_params, dim):
    """Trace-time glue (zero runtime cost inside the kernel):
      * fold dwconv1/dwconv3 into dwconv5 (exactly MSConv.fuse()),
      * de-interleave the groups=C output channels into [even-block | odd-block],
      * reorder the pointwise weight columns to match, kept as a single (C, 2C),
      * DROP all biases: InstanceNorm1d (no affine) subtracts the per-channel
        mean, so per-channel constant offsets cancel exactly.
    """
    dw1_w, _dw1_b, dw3_w, _dw3_b, dw5_w, _dw5_b, pw_w, _pw_b = torch_params
    perm = jnp.concatenate([jnp.arange(0, 2 * dim, 2), jnp.arange(1, 2 * dim, 2)])

    w_eff = dw5_w[:, 0, :]                               # (2C, 5)
    w_eff = w_eff.at[:, 1:4].add(dw3_w[:, 0, :])
    w_eff = w_eff.at[:, 2].add(dw1_w[:, 0, 0])
    w_eff = w_eff[perm]                                  # de-interleave out-channels

    w_k = jnp.stack([w_eff[:dim], w_eff[dim:]], axis=0)  # (2, C, 5)
    pw_k = pw_w[:, perm, 0]                              # (C, 2C), columns reordered
    return w_k, pw_k


# --------------------------- pure-JAX reference ------------------------------
def msconv_ref(x, torch_params):
    dw1_w, dw1_b, dw3_w, dw3_b, dw5_w, dw5_b, pw_w, pw_b = torch_params
    C = x.shape[1]

    def dwconv(x, w, b):
        K = w.shape[-1]
        p = (K - 1) // 2
        out = jax.lax.conv_general_dilated(
            x, w, window_strides=(1,), padding=[(p, p)],
            dimension_numbers=("NCH", "OIH", "NCH"),
            feature_group_count=C)
        return out + b[None, :, None]

    y = dwconv(x, dw1_w, dw1_b) + dwconv(x, dw3_w, dw3_b) + dwconv(x, dw5_w, dw5_b)
    z = jax.lax.conv_general_dilated(
        y, pw_w, window_strides=(1,), padding=[(0, 0)],
        dimension_numbers=("NCH", "OIH", "NCH")) + pw_b[None, :, None]
    mean = z.mean(axis=2, keepdims=True)
    var = ((z - mean) ** 2).mean(axis=2, keepdims=True)
    zn = (z - mean) / jnp.sqrt(var + 1e-5)
    return jax.nn.gelu(zn, approximate=False)


# ------------------------------- main -----------------------------------------
if __name__ == "__main__":
    B, dim, L = 4, 8, 128
    key = jax.random.PRNGKey(0)
    k_x, k_p = jax.random.split(key)
    x = jax.random.normal(k_x, (B, dim, L), jnp.float32)

    torch_params = make_params(dim, k_p)
    kernel_params = fold_params(torch_params, dim)

    ref = jax.block_until_ready(msconv_ref(x, torch_params))
    out = jax.block_until_ready(msconv_forward(x, kernel_params))
    np.testing.assert_allclose(np.asarray(out), np.asarray(ref), atol=1e-3, rtol=1e-3)

    print("KERNEL_OK")
</pallas_src>

<mosaic_0001>
module attributes {stable_mosaic.version = 11 : i64} {
  func.func @msconv_kernel(%arg0: i32, %arg1: memref<4x8x128xf32, #tpu.memory_space<vmem>>, %arg2: memref<2x8x5xf32, #tpu.memory_space<vmem>>, %arg3: memref<8x16xf32, #tpu.memory_space<vmem>>, %arg4: memref<4x8x128xf32, #tpu.memory_space<vmem>>, %arg5: memref<16x512xf32, #tpu.memory_space<vmem>>) attributes {dimension_semantics = [#tpu.dimension_semantics<parallel>], iteration_bounds = array<i64: 1>, scalar_prefetch = 0 : i64, scratch_operands = 1 : i64, tpu.core_type = #tpu.core_type<tc>, window_params = [{transform_indices = @transform_0, window_bounds = array<i64: 4, 8, 128>}, {pipeline_mode = #tpu.pipeline_mode<synchronous>, transform_indices = @transform_1, window_bounds = array<i64: 2, 8, 5>}, {pipeline_mode = #tpu.pipeline_mode<synchronous>, transform_indices = @transform_2, window_bounds = array<i64: 8, 16>}, {transform_indices = @transform_3, window_bounds = array<i64: 4, 8, 128>}]} {
    %c0 = arith.constant 0 : index
    %c0_0 = arith.constant 0 : index
    %c0_1 = arith.constant 0 : index
    %0 = vector.load %arg1[%c0, %c0_0, %c0_1] : memref<4x8x128xf32, #tpu.memory_space<vmem>>, vector<4x8x128xf32>
    %1 = vector.shape_cast %0 : vector<4x8x128xf32> to vector<32x128xf32>
    %2 = tpu.iota {dimensions = array<i32: 1>} : vector<32x128xi32>
    %c0_2 = arith.constant 0 : index
    %c0_3 = arith.constant 0 : index
    %c0_4 = arith.constant 0 : index
    %3 = vector.load %arg2[%c0_2, %c0_3, %c0_4] : memref<2x8x5xf32, #tpu.memory_space<vmem>>, vector<1x8x5xf32>
    %4 = vector.shape_cast %3 : vector<1x8x5xf32> to vector<8x5xf32>
    %c1 = arith.constant 1 : index
    %c0_5 = arith.constant 0 : index
    %c0_6 = arith.constant 0 : index
    %5 = vector.load %arg2[%c1, %c0_5, %c0_6] : memref<2x8x5xf32, #tpu.memory_space<vmem>>, vector<1x8x5xf32>
    %6 = vector.shape_cast %5 : vector<1x8x5xf32> to vector<8x5xf32>
    %7 = vector.extract_strided_slice %4 {offsets = [0, 0], sizes = [8, 1], strides = [1, 1]} : vector<8x5xf32> to vector<8x1xf32>
    %8 = vector.extract_strided_slice %4 {offsets = [0, 1], sizes = [8, 1], strides = [1, 1]} : vector<8x5xf32> to vector<8x1xf32>
    %9 = vector.extract_strided_slice %4 {offsets = [0, 2], sizes = [8, 1], strides = [1, 1]} : vector<8x5xf32> to vector<8x1xf32>
    %10 = vector.extract_strided_slice %4 {offsets = [0, 3], sizes = [8, 1], strides = [1, 1]} : vector<8x5xf32> to vector<8x1xf32>
    %11 = vector.extract_strided_slice %4 {offsets = [0, 4], sizes = [8, 1], strides = [1, 1]} : vector<8x5xf32> to vector<8x1xf32>
    %12 = vector.extract_strided_slice %6 {offsets = [0, 0], sizes = [8, 1], strides = [1, 1]} : vector<8x5xf32> to vector<8x1xf32>
    %13 = vector.extract_strided_slice %6 {offsets = [0, 1], sizes = [8, 1], strides = [1, 1]} : vector<8x5xf32> to vector<8x1xf32>
    %14 = vector.extract_strided_slice %6 {offsets = [0, 2], sizes = [8, 1], strides = [1, 1]} : vector<8x5xf32> to vector<8x1xf32>
    %15 = vector.extract_strided_slice %6 {offsets = [0, 3], sizes = [8, 1], strides = [1, 1]} : vector<8x5xf32> to vector<8x1xf32>
    %16 = vector.extract_strided_slice %6 {offsets = [0, 4], sizes = [8, 1], strides = [1, 1]} : vector<8x5xf32> to vector<8x1xf32>
    %17 = vector.shape_cast %9 : vector<8x1xf32> to vector<1x8x1xf32>
    %18 = vector.broadcast %17 : vector<1x8x1xf32> to vector<4x8x128xf32>
    %19 = arith.mulf %0, %18 : vector<4x8x128xf32>
    %20 = vector.shape_cast %14 : vector<8x1xf32> to vector<1x8x1xf32>
    %21 = vector.broadcast %20 : vector<1x8x1xf32> to vector<4x8x128xf32>
    %22 = arith.mulf %0, %21 : vector<4x8x128xf32>
    %c2_i32 = arith.constant 2 : i32
    %23 = tpu.dynamic_rotate %1 by %c2_i32 dim 1 : vector<32x128xf32>, i32 -> vector<32x128xf32>
    %c2_i32_7 = arith.constant 2 : i32
    %24 = vector.broadcast %c2_i32_7 : i32 to vector<32x128xi32>
    %25 = arith.cmpi sge, %2, %24 : vector<32x128xi32>
    %cst = arith.constant 0.000000e+00 : f32
    %26 = vector.broadcast %cst : f32 to vector<32x128xf32>
    %27 = arith.select %25, %23, %26 : vector<32x128xi1>, vector<32x128xf32>
    %28 = vector.shape_cast %27 : vector<32x128xf32> to vector<4x8x128xf32>
    %29 = vector.shape_cast %7 : vector<8x1xf32> to vector<1x8x1xf32>
    %30 = vector.broadcast %29 : vector<1x8x1xf32> to vector<4x8x128xf32>
    %31 = arith.mulf %28, %30 : vector<4x8x128xf32>
    %32 = arith.addf %19, %31 : vector<4x8x128xf32>
    %33 = vector.shape_cast %12 : vector<8x1xf32> to vector<1x8x1xf32>
    %34 = vector.broadcast %33 : vector<1x8x1xf32> to vector<4x8x128xf32>
    %35 = arith.mulf %28, %34 : vector<4x8x128xf32>
    %36 = arith.addf %22, %35 : vector<4x8x128xf32>
    %c1_i32 = arith.constant 1 : i32
    %37 = tpu.dynamic_rotate %1 by %c1_i32 dim 1 : vector<32x128xf32>, i32 -> vector<32x128xf32>
    %c1_i32_8 = arith.constant 1 : i32
    %38 = vector.broadcast %c1_i32_8 : i32 to vector<32x128xi32>
    %39 = arith.cmpi sge, %2, %38 : vector<32x128xi32>
    %cst_9 = arith.constant 0.000000e+00 : f32
    %40 = vector.broadcast %cst_9 : f32 to vector<32x128xf32>
    %41 = arith.select %39, %37, %40 : vector<32x128xi1>, vector<32x128xf32>
    %42 = vector.shape_cast %41 : vector<32x128xf32> to vector<4x8x128xf32>
    %43 = vector.shape_cast %8 : vector<8x1xf32> to vector<1x8x1xf32>
    %44 = vector.broadcast %43 : vector<1x8x1xf32> to vector<4x8x128xf32>
    %45 = arith.mulf %42, %44 : vector<4x8x128xf32>
    %46 = arith.addf %32, %45 : vector<4x8x128xf32>
    %47 = vector.shape_cast %13 : vector<8x1xf32> to vector<1x8x1xf32>
    %48 = vector.broadcast %47 : vector<1x8x1xf32> to vector<4x8x128xf32>
    %49 = arith.mulf %42, %48 : vector<4x8x128xf32>
    %50 = arith.addf %36, %49 : vector<4x8x128xf32>
    %c127_i32 = arith.constant 127 : i32
    %51 = tpu.dynamic_rotate %1 by %c127_i32 dim 1 : vector<32x128xf32>, i32 -> vector<32x128xf32>
    %c127_i32_10 = arith.constant 127 : i32
    %52 = vector.broadcast %c127_i32_10 : i32 to vector<32x128xi32>
    %53 = arith.cmpi slt, %2, %52 : vector<32x128xi32>
    %cst_11 = arith.constant 0.000000e+00 : f32
    %54 = vector.broadcast %cst_11 : f32 to vector<32x128xf32>
    %55 = arith.select %53, %51, %54 : vector<32x128xi1>, vector<32x128xf32>
    %56 = vector.shape_cast %55 : vector<32x128xf32> to vector<4x8x128xf32>
    %57 = vector.shape_cast %10 : vector<8x1xf32> to vector<1x8x1xf32>
    %58 = vector.broadcast %57 : vector<1x8x1xf32> to vector<4x8x128xf32>
    %59 = arith.mulf %56, %58 : vector<4x8x128xf32>
    %60 = arith.addf %46, %59 : vector<4x8x128xf32>
    %61 = vector.shape_cast %15 : vector<8x1xf32> to vector<1x8x1xf32>
    %62 = vector.broadcast %61 : vector<1x8x1xf32> to vector<4x8x128xf32>
    %63 = arith.mulf %56, %62 : vector<4x8x128xf32>
    %64 = arith.addf %50, %63 : vector<4x8x128xf32>
    %c126_i32 = arith.constant 126 : i32
    %65 = tpu.dynamic_rotate %1 by %c126_i32 dim 1 : vector<32x128xf32>, i32 -> vector<32x128xf32>
    %c126_i32_12 = arith.constant 126 : i32
    %66 = vector.broadcast %c126_i32_12 : i32 to vector<32x128xi32>
    %67 = arith.cmpi slt, %2, %66 : vector<32x128xi32>
    %cst_13 = arith.constant 0.000000e+00 : f32
    %68 = vector.broadcast %cst_13 : f32 to vector<32x128xf32>
    %69 = arith.select %67, %65, %68 : vector<32x128xi1>, vector<32x128xf32>
    %70 = vector.shape_cast %69 : vector<32x128xf32> to vector<4x8x128xf32>
    %71 = vector.shape_cast %11 : vector<8x1xf32> to vector<1x8x1xf32>
    %72 = vector.broadcast %71 : vector<1x8x1xf32> to vector<4x8x128xf32>
    %73 = arith.mulf %70, %72 : vector<4x8x128xf32>
    %74 = arith.addf %60, %73 : vector<4x8x128xf32>
    %75 = vector.shape_cast %16 : vector<8x1xf32> to vector<1x8x1xf32>
    %76 = vector.broadcast %75 : vector<1x8x1xf32> to vector<4x8x128xf32>
    %77 = arith.mulf %70, %76 : vector<4x8x128xf32>
    %78 = arith.addf %64, %77 : vector<4x8x128xf32>
    %79 = vector.extract_strided_slice %74 {offsets = [0, 0, 0], sizes = [1, 8, 128], strides = [1, 1, 1]} : vector<4x8x128xf32> to vector<1x8x128xf32>
    %80 = vector.shape_cast %79 : vector<1x8x128xf32> to vector<8x128xf32>
    %c0_14 = arith.constant 0 : index
    %c0_15 = arith.constant 0 : index
    %81 = vector.load %arg5[%c0_14, %c0_15] : memref<16x512xf32, #tpu.memory_space<vmem>>, vector<8x128xf32>
    tpu.vector_store %arg5[%c0_14, %c0_15], %80 {strides = array<i32>} : memref<16x512xf32, #tpu.memory_space<vmem>>, vector<8x128xf32>,
    %82 = vector.extract_strided_slice %78 {offsets = [0, 0, 0], sizes = [1, 8, 128], strides = [1, 1, 1]} : vector<4x8x128xf32> to vector<1x8x128xf32>
    %83 = vector.shape_cast %82 : vector<1x8x128xf32> to vector<8x128xf32>
    %c8 = arith.constant 8 : index
    %c0_16 = arith.constant 0 : index
    %84 = vector.load %arg5[%c8, %c0_16] : memref<16x512xf32, #tpu.memory_space<vmem>>, vector<8x128xf32>
    tpu.vector_store %arg5[%c8, %c0_16], %83 {strides = array<i32>} : memref<16x512xf32, #tpu.memory_space<vmem>>, vector<8x128xf32>,
    %85 = vector.extract_strided_slice %74 {offsets = [1, 0, 0], sizes = [1, 8, 128], strides = [1, 1, 1]} : vector<4x8x128xf32> to vector<1x8x128xf32>
    %86 = vector.shape_cast %85 : vector<1x8x128xf32> to vector<8x128xf32>
    %c0_17 = arith.constant 0 : index
    %c128 = arith.constant 128 : index
    %87 = vector.load %arg5[%c0_17, %c128] : memref<16x512xf32, #tpu.memory_space<vmem>>, vector<8x128xf32>
    tpu.vector_store %arg5[%c0_17, %c128], %86 {strides = array<i32>} : memref<16x512xf32, #tpu.memory_space<vmem>>, vector<8x128xf32>,
    %88 = vector.extract_strided_slice %78 {offsets = [1, 0, 0], sizes = [1, 8, 128], strides = [1, 1, 1]} : vector<4x8x128xf32> to vector<1x8x128xf32>
    %89 = vector.shape_cast %88 : vector<1x8x128xf32> to vector<8x128xf32>
    %c8_18 = arith.constant 8 : index
    %c128_19 = arith.constant 128 : index
    %90 = vector.load %arg5[%c8_18, %c128_19] : memref<16x512xf32, #tpu.memory_space<vmem>>, vector<8x128xf32>
    tpu.vector_store %arg5[%c8_18, %c128_19], %89 {strides = array<i32>} : memref<16x512xf32, #tpu.memory_space<vmem>>, vector<8x128xf32>,
    %91 = vector.extract_strided_slice %74 {offsets = [2, 0, 0], sizes = [1, 8, 128], strides = [1, 1, 1]} : vector<4x8x128xf32> to vector<1x8x128xf32>
    %92 = vector.shape_cast %91 : vector<1x8x128xf32> to vector<8x128xf32>
    %c0_20 = arith.constant 0 : index
    %c256 = arith.constant 256 : index
    %93 = vector.load %arg5[%c0_20, %c256] : memref<16x512xf32, #tpu.memory_space<vmem>>, vector<8x128xf32>
    tpu.vector_store %arg5[%c0_20, %c256], %92 {strides = array<i32>} : memref<16x512xf32, #tpu.memory_space<vmem>>, vector<8x128xf32>,
    %94 = vector.extract_strided_slice %78 {offsets = [2, 0, 0], sizes = [1, 8, 128], strides = [1, 1, 1]} : vector<4x8x128xf32> to vector<1x8x128xf32>
    %95 = vector.shape_cast %94 : vector<1x8x128xf32> to vector<8x128xf32>
    %c8_21 = arith.constant 8 : index
    %c256_22 = arith.constant 256 : index
    %96 = vector.load %arg5[%c8_21, %c256_22] : memref<16x512xf32, #tpu.memory_space<vmem>>, vector<8x128xf32>
    tpu.vector_store %arg5[%c8_21, %c256_22], %95 {strides = array<i32>} : memref<16x512xf32, #tpu.memory_space<vmem>>, vector<8x128xf32>,
    %97 = vector.extract_strided_slice %74 {offsets = [3, 0, 0], sizes = [1, 8, 128], strides = [1, 1, 1]} : vector<4x8x128xf32> to vector<1x8x128xf32>
    %98 = vector.shape_cast %97 : vector<1x8x128xf32> to vector<8x128xf32>
    %c0_23 = arith.constant 0 : index
    %c384 = arith.constant 384 : index
    %99 = vector.load %arg5[%c0_23, %c384] : memref<16x512xf32, #tpu.memory_space<vmem>>, vector<8x128xf32>
    tpu.vector_store %arg5[%c0_23, %c384], %98 {strides = array<i32>} : memref<16x512xf32, #tpu.memory_space<vmem>>, vector<8x128xf32>,
    %100 = vector.extract_strided_slice %78 {offsets = [3, 0, 0], sizes = [1, 8, 128], strides = [1, 1, 1]} : vector<4x8x128xf32> to vector<1x8x128xf32>
    %101 = vector.shape_cast %100 : vector<1x8x128xf32> to vector<8x128xf32>
    %c8_24 = arith.constant 8 : index
    %c384_25 = arith.constant 384 : index
    %102 = vector.load %arg5[%c8_24, %c384_25] : memref<16x512xf32, #tpu.memory_space<vmem>>, vector<8x128xf32>
    tpu.vector_store %arg5[%c8_24, %c384_25], %101 {strides = array<i32>} : memref<16x512xf32, #tpu.memory_space<vmem>>, vector<8x128xf32>,
    %c0_26 = arith.constant 0 : index
    %c0_27 = arith.constant 0 : index
    %103 = vector.load %arg3[%c0_26, %c0_27] : memref<8x16xf32, #tpu.memory_space<vmem>>, vector<8x16xf32>
    %c0_28 = arith.constant 0 : index
    %c0_29 = arith.constant 0 : index
    %104 = vector.load %arg5[%c0_28, %c0_29] : memref<16x512xf32, #tpu.memory_space<vmem>>, vector<16x512xf32>
    %cst_30 = arith.constant dense<0.000000e+00> : vector<8x512xf32>
    %105 = tpu.matmul %103, %104, %cst_30 {dimension_numbers = #tpu.dot_dimension_numbers<[1], [0], [0], [1], [0, 0, 1, 1], [], []>} : vector<8x16xf32>, vector<16x512xf32>, vector<8x512xf32> -> vector<8x512xf32>
    %106 = vector.extract_strided_slice %105 {offsets = [0, 0], sizes = [8, 128], strides = [1, 1]} : vector<8x512xf32> to vector<8x128xf32>
    %cst_31 = arith.constant dense<0.000000e+00> : vector<8xf32>
    %107 = vector.multi_reduction <add>, %106, %cst_31 [1] : vector<8x128xf32> to vector<8xf32>
    %108 = vector.shape_cast %107 : vector<8xf32> to vector<8x1xf32>
    %cst_32 = arith.constant 1.280000e+02 : f32
    %109 = vector.broadcast %cst_32 : f32 to vector<8x1xf32>
    %110 = arith.divf %108, %109 : vector<8x1xf32>
    %111 = vector.broadcast %110 : vector<8x1xf32> to vector<8x128xf32>
    %112 = arith.subf %106, %111 : vector<8x128xf32>
    %113 = arith.mulf %112, %112 : vector<8x128xf32>
    %cst_33 = arith.constant dense<0.000000e+00> : vector<8xf32>
    %114 = vector.multi_reduction <add>, %113, %cst_33 [1] : vector<8x128xf32> to vector<8xf32>
    %115 = vector.shape_cast %114 : vector<8xf32> to vector<8x1xf32>
    %cst_34 = arith.constant 1.280000e+02 : f32
    %116 = vector.broadcast %cst_34 : f32 to vector<8x1xf32>
    %117 = arith.divf %115, %116 : vector<8x1xf32>
    %cst_35 = arith.constant 9.99999974E-6 : f32
    %118 = vector.broadcast %cst_35 : f32 to vector<8x1xf32>
    %119 = arith.addf %117, %118 : vector<8x1xf32>
    %120 = math.rsqrt %119 : vector<8x1xf32>
    %121 = vector.broadcast %120 : vector<8x1xf32> to vector<8x128xf32>
    %122 = arith.mulf %112, %121 : vector<8x128xf32>
    %cst_36 = arith.constant 5.000000e-01 : f32
    %123 = vector.broadcast %cst_36 : f32 to vector<8x128xf32>
    %124 = arith.mulf %123, %122 : vector<8x128xf32>
    %cst_37 = arith.constant 0.707106769 : f32
    %125 = vector.broadcast %cst_37 : f32 to vector<8x128xf32>
    %126 = arith.mulf %122, %125 : vector<8x128xf32>
    %127 = math.erf %126 : vector<8x128xf32>
    %cst_38 = arith.constant 1.000000e+00 : f32
    %128 = vector.broadcast %cst_38 : f32 to vector<8x128xf32>
    %129 = arith.addf %128, %127 : vector<8x128xf32>
    %130 = arith.mulf %124, %129 : vector<8x128xf32>
    %c0_39 = arith.constant 0 : index
    %c0_40 = arith.constant 0 : index
    %c0_41 = arith.constant 0 : index
    %131 = vector.load %arg4[%c0_39, %c0_40, %c0_41] : memref<4x8x128xf32, #tpu.memory_space<vmem>>, vector<1x8x128xf32>
    %132 = vector.shape_cast %131 : vector<1x8x128xf32> to vector<8x128xf32>
    %133 = vector.shape_cast %130 : vector<8x128xf32> to vector<1x8x128xf32>
    tpu.vector_store %arg4[%c0_39, %c0_40, %c0_41], %133 {strides = array<i32>} : memref<4x8x128xf32, #tpu.memory_space<vmem>>, vector<1x8x128xf32>,
    %134 = vector.extract_strided_slice %105 {offsets = [0, 128], sizes = [8, 128], strides = [1, 1]} : vector<8x512xf32> to vector<8x128xf32>
    %cst_42 = arith.constant dense<0.000000e+00> : vector<8xf32>
    %135 = vector.multi_reduction <add>, %134, %cst_42 [1] : vector<8x128xf32> to vector<8xf32>
    %136 = vector.shape_cast %135 : vector<8xf32> to vector<8x1xf32>
    %cst_43 = arith.constant 1.280000e+02 : f32
    %137 = vector.broadcast %cst_43 : f32 to vector<8x1xf32>
    %138 = arith.divf %136, %137 : vector<8x1xf32>
    %139 = vector.broadcast %138 : vector<8x1xf32> to vector<8x128xf32>
    %140 = arith.subf %134, %139 : vector<8x128xf32>
    %141 = arith.mulf %140, %140 : vector<8x128xf32>
    %cst_44 = arith.constant dense<0.000000e+00> : vector<8xf32>
    %142 = vector.multi_reduction <add>, %141, %cst_44 [1] : vector<8x128xf32> to vector<8xf32>
    %143 = vector.shape_cast %142 : vector<8xf32> to vector<8x1xf32>
    %cst_45 = arith.constant 1.280000e+02 : f32
    %144 = vector.broadcast %cst_45 : f32 to vector<8x1xf32>
    %145 = arith.divf %143, %144 : vector<8x1xf32>
    %cst_46 = arith.constant 9.99999974E-6 : f32
    %146 = vector.broadcast %cst_46 : f32 to vector<8x1xf32>
    %147 = arith.addf %145, %146 : vector<8x1xf32>
    %148 = math.rsqrt %147 : vector<8x1xf32>
    %149 = vector.broadcast %148 : vector<8x1xf32> to vector<8x128xf32>
    %150 = arith.mulf %140, %149 : vector<8x128xf32>
    %cst_47 = arith.constant 5.000000e-01 : f32
    %151 = vector.broadcast %cst_47 : f32 to vector<8x128xf32>
    %152 = arith.mulf %151, %150 : vector<8x128xf32>
    %cst_48 = arith.constant 0.707106769 : f32
    %153 = vector.broadcast %cst_48 : f32 to vector<8x128xf32>
    %154 = arith.mulf %150, %153 : vector<8x128xf32>
    %155 = math.erf %154 : vector<8x128xf32>
    %cst_49 = arith.constant 1.000000e+00 : f32
    %156 = vector.broadcast %cst_49 : f32 to vector<8x128xf32>
    %157 = arith.addf %156, %155 : vector<8x128xf32>
    %158 = arith.mulf %152, %157 : vector<8x128xf32>
    %c1_50 = arith.constant 1 : index
    %c0_51 = arith.constant 0 : index
    %c0_52 = arith.constant 0 : index
    %159 = vector.load %arg4[%c1_50, %c0_51, %c0_52] : memref<4x8x128xf32, #tpu.memory_space<vmem>>, vector<1x8x128xf32>
    %160 = vector.shape_cast %159 : vector<1x8x128xf32> to vector<8x128xf32>
    %161 = vector.shape_cast %158 : vector<8x128xf32> to vector<1x8x128xf32>
    tpu.vector_store %arg4[%c1_50, %c0_51, %c0_52], %161 {strides = array<i32>} : memref<4x8x128xf32, #tpu.memory_space<vmem>>, vector<1x8x128xf32>,
    %162 = vector.extract_strided_slice %105 {offsets = [0, 256], sizes = [8, 128], strides = [1, 1]} : vector<8x512xf32> to vector<8x128xf32>
    %cst_53 = arith.constant dense<0.000000e+00> : vector<8xf32>
    %163 = vector.multi_reduction <add>, %162, %cst_53 [1] : vector<8x128xf32> to vector<8xf32>
    %164 = vector.shape_cast %163 : vector<8xf32> to vector<8x1xf32>
    %cst_54 = arith.constant 1.280000e+02 : f32
    %165 = vector.broadcast %cst_54 : f32 to vector<8x1xf32>
    %166 = arith.divf %164, %165 : vector<8x1xf32>
    %167 = vector.broadcast %166 : vector<8x1xf32> to vector<8x128xf32>
    %168 = arith.subf %162, %167 : vector<8x128xf32>
    %169 = arith.mulf %168, %168 : vector<8x128xf32>
    %cst_55 = arith.constant dense<0.000000e+00> : vector<8xf32>
    %170 = vector.multi_reduction <add>, %169, %cst_55 [1] : vector<8x128xf32> to vector<8xf32>
    %171 = vector.shape_cast %170 : vector<8xf32> to vector<8x1xf32>
    %cst_56 = arith.constant 1.280000e+02 : f32
    %172 = vector.broadcast %cst_56 : f32 to vector<8x1xf32>
    %173 = arith.divf %171, %172 : vector<8x1xf32>
    %cst_57 = arith.constant 9.99999974E-6 : f32
    %174 = vector.broadcast %cst_57 : f32 to vector<8x1xf32>
    %175 = arith.addf %173, %174 : vector<8x1xf32>
    %176 = math.rsqrt %175 : vector<8x1xf32>
    %177 = vector.broadcast %176 : vector<8x1xf32> to vector<8x128xf32>
    %178 = arith.mulf %168, %177 : vector<8x128xf32>
    %cst_58 = arith.constant 5.000000e-01 : f32
    %179 = vector.broadcast %cst_58 : f32 to vector<8x128xf32>
    %180 = arith.mulf %179, %178 : vector<8x128xf32>
    %cst_59 = arith.constant 0.707106769 : f32
    %181 = vector.broadcast %cst_59 : f32 to vector<8x128xf32>
    %182 = arith.mulf %178, %181 : vector<8x128xf32>
    %183 = math.erf %182 : vector<8x128xf32>
    %cst_60 = arith.constant 1.000000e+00 : f32
    %184 = vector.broadcast %cst_60 : f32 to vector<8x128xf32>
    %185 = arith.addf %184, %183 : vector<8x128xf32>
    %186 = arith.mulf %180, %185 : vector<8x128xf32>
    %c2 = arith.constant 2 : index
    %c0_61 = arith.constant 0 : index
    %c0_62 = arith.constant 0 : index
    %187 = vector.load %arg4[%c2, %c0_61, %c0_62] : memref<4x8x128xf32, #tpu.memory_space<vmem>>, vector<1x8x128xf32>
    %188 = vector.shape_cast %187 : vector<1x8x128xf32> to vector<8x128xf32>
    %189 = vector.shape_cast %186 : vector<8x128xf32> to vector<1x8x128xf32>
    tpu.vector_store %arg4[%c2, %c0_61, %c0_62], %189 {strides = array<i32>} : memref<4x8x128xf32, #tpu.memory_space<vmem>>, vector<1x8x128xf32>,
    %190 = vector.extract_strided_slice %105 {offsets = [0, 384], sizes = [8, 128], strides = [1, 1]} : vector<8x512xf32> to vector<8x128xf32>
    %cst_63 = arith.constant dense<0.000000e+00> : vector<8xf32>
    %191 = vector.multi_reduction <add>, %190, %cst_63 [1] : vector<8x128xf32> to vector<8xf32>
    %192 = vector.shape_cast %191 : vector<8xf32> to vector<8x1xf32>
    %cst_64 = arith.constant 1.280000e+02 : f32
    %193 = vector.broadcast %cst_64 : f32 to vector<8x1xf32>
    %194 = arith.divf %192, %193 : vector<8x1xf32>
    %195 = vector.broadcast %194 : vector<8x1xf32> to vector<8x128xf32>
    %196 = arith.subf %190, %195 : vector<8x128xf32>
    %197 = arith.mulf %196, %196 : vector<8x128xf32>
    %cst_65 = arith.constant dense<0.000000e+00> : vector<8xf32>
    %198 = vector.multi_reduction <add>, %197, %cst_65 [1] : vector<8x128xf32> to vector<8xf32>
    %199 = vector.shape_cast %198 : vector<8xf32> to vector<8x1xf32>
    %cst_66 = arith.constant 1.280000e+02 : f32
    %200 = vector.broadcast %cst_66 : f32 to vector<8x1xf32>
    %201 = arith.divf %199, %200 : vector<8x1xf32>
    %cst_67 = arith.constant 9.99999974E-6 : f32
    %202 = vector.broadcast %cst_67 : f32 to vector<8x1xf32>
    %203 = arith.addf %201, %202 : vector<8x1xf32>
    %204 = math.rsqrt %203 : vector<8x1xf32>
    %205 = vector.broadcast %204 : vector<8x1xf32> to vector<8x128xf32>
    %206 = arith.mulf %196, %205 : vector<8x128xf32>
    %cst_68 = arith.constant 5.000000e-01 : f32
    %207 = vector.broadcast %cst_68 : f32 to vector<8x128xf32>
    %208 = arith.mulf %207, %206 : vector<8x128xf32>
    %cst_69 = arith.constant 0.707106769 : f32
    %209 = vector.broadcast %cst_69 : f32 to vector<8x128xf32>
    %210 = arith.mulf %206, %209 : vector<8x128xf32>
    %211 = math.erf %210 : vector<8x128xf32>
    %cst_70 = arith.constant 1.000000e+00 : f32
    %212 = vector.broadcast %cst_70 : f32 to vector<8x128xf32>
    %213 = arith.addf %212, %211 : vector<8x128xf32>
    %214 = arith.mulf %208, %213 : vector<8x128xf32>
    %c3 = arith.constant 3 : index
    %c0_71 = arith.constant 0 : index
    %c0_72 = arith.constant 0 : index
    %215 = vector.load %arg4[%c3, %c0_71, %c0_72] : memref<4x8x128xf32, #tpu.memory_space<vmem>>, vector<1x8x128xf32>
    %216 = vector.shape_cast %215 : vector<1x8x128xf32> to vector<8x128xf32>
    %217 = vector.shape_cast %214 : vector<8x128xf32> to vector<1x8x128xf32>
    tpu.vector_store %arg4[%c3, %c0_71, %c0_72], %217 {strides = array<i32>} : memref<4x8x128xf32, #tpu.memory_space<vmem>>, vector<1x8x128xf32>,
    return
  }
  func.func @transform_0(%arg0: i32) -> (i32, i32, i32) {
    %c0_i32 = arith.constant 0 : i32
    %c0_i32_0 = arith.constant 0 : i32
    %c0_i32_1 = arith.constant 0 : i32
    return %arg0, %c0_i32, %c0_i32_0 : i32, i32, i32
  }
  func.func @transform_1(%arg0: i32) -> (i32, i32, i32) {
    %c0_i32 = arith.constant 0 : i32
    %c0_i32_0 = arith.constant 0 : i32
    %c0_i32_1 = arith.constant 0 : i32
    %c0_i32_2 = arith.constant 0 : i32
    return %c0_i32, %c0_i32_0, %c0_i32_1 : i32, i32, i32
  }
  func.func @transform_2(%arg0: i32) -> (i32, i32) {
    %c0_i32 = arith.constant 0 : i32
    %c0_i32_0 = arith.constant 0 : i32
    %c0_i32_1 = arith.constant 0 : i32
    return %c0_i32, %c0_i32_0 : i32, i32
  }
  func.func @transform_3(%arg0: i32) -> (i32, i32, i32) {
    %c0_i32 = arith.constant 0 : i32
    %c0_i32_0 = arith.constant 0 : i32
    %c0_i32_1 = arith.constant 0 : i32
    return %arg0, %c0_i32, %c0_i32_0 : i32, i32, i32
  }
}

</mosaic_0001>

<bundles_post_ra>
// kernel: tpu_custom_call.1
= control target key start
LH: loop header
LB: loop body
LE: loop exit
PB: predicated region body
PF: predicated region fallthrough
CT: control target
= control target key end

     0   :  { %8 = vsyncpa [#allocation4], 0  ;;  %s719_s0 = inlined_call_operand.hbm [shape: f32[4,8,128], index: 0, kind: input, shape index: {}]   ;;  %s720_s1 = inlined_call_operand.vmem [shape: f32[2,8,5], index: 1, kind: input, shape index: {}]   ;;  %s721_s2 = inlined_call_operand.vmem [shape: f32[8,16], index: 2, kind: input, shape index: {}]   ;;  %s722_s3 = inlined_call_operand.hbm [shape: f32[4,8,128], index: 3, kind: output, shape index: {}]  }
   0x1   :  { %9 = vsyncpa [#allocation5], 0  ;;  %s541_s12 = smov [#allocation3]  }
   0x2   :  { %s15_s13 = sshll.u32 %s541_s12, 4  ;;  %s16_s13 = int_to_ptr.vmem [resolvable:$true] %s15_s13 }
   0x3   :  { %s505_s14 = scalar_lea.vmem %s16_s13, 512  ;;  %p510_p1 = scmp.lt.s32.totalorder %s16_s13, %s16_s13 }
   0x4   :  { %p506_p0 = scmp.ne.s32.totalorder %s16_s13, %s505_s14  ;;  %p511_p2 = scmp.lt.s32.totalorder %s505_s14, %s505_s14 }
   0x6   :  { %p512_p3 = por %p511_p2, %p510_p1 }
   0x8   :  { %p513_p4 = pnand %p512_p3, %p506_p0 }
   0xa   :  { %516 = shalt.err (!%p513_p4)
}
   0xb   :  { %s542_s15 = smov 128   ;;  %s543_s16 = smov 8  }
   0xc   :  { %21 = dma.hbm_to_vmem [thread:$0]  %s719_s0, 512, %s16_s13, [#allocation4], %s542_s15, %s542_s15, %s543_s16  }
   0xd   :  { %537 = dma.done.wait [#allocation4], 512  }
   0xe   :  { %538 = vsyncadd [#allocation4], 4294966784  ;;  %v544_v0 = vmov 2   ;;  %v456_v1 = vld [vmem:[%s720_s1 + $0x8] sm:$0xff]  ;;  %v35_v2 = vld [vmem:[%s720_s1] sm:$0xff]  ;;  %v545_v3 = vmov 0   ;;  %v33_v24 = vlaneseq }
   0xf   :  { %475 = vset.pattern.permute.xlu1 %v544_v0  ;;  %473 = vset.pattern.permute.xlu0 %v544_v0  ;;  %v587_v4 = vld [vmem:[#allocation3 + $0x8] sm:$0xff]  ;;  %v546_v5 = vmov 1   ;;  %s547_s0 = smov 2   ;;  %v590_v6 = vld [vmem:[#allocation3 + $0x18] sm:$0xff]  ;;  %v593_v7 = vld [vmem:[#allocation3 + $0x10] sm:$0xff]  ;;  %v548_v8 = vmov 3  }
  0x10   :  { %49 = vperm.xlu0 %473, %v456_v1   ;;  %40 = vperm.xlu1 %475, %v35_v2   ;;  %v549_v9 = vmov 4   ;;  %v596_v10 = vld [vmem:[#allocation3] sm:$0xff]  ;;  %s550_s1 = smov 1   ;;  %s551_s23 = smov 127   ;;  %v553_v11 = vmov 0.0   ;;  %v623_v27 = vand.u32 127, %v33_v24 }
  0x11   :  { %s552_s24 = smov 126   ;;  %289 = vmatprep.mubr.f32.mxu0 %v553_v11  ;;  %360 = vmatprep.mubr.f32.mxu1 %v553_v11  ;;  %vm221_vm4 = vcmask 130048  }
  0x12   :  { %vm64_vm0 = vcmp.ge.s32.totalorder %v623_v27, 2  ;;  %vm101_vm1 = vcmp.ge.s32.totalorder %v623_v27, 1  ;;  %vm138_vm2 = vcmp.lt.s32.totalorder %v623_v27, 127  ;;  %vm175_vm3 = vcmp.lt.s32.totalorder %v623_v27, 126 }
  0x14   :  { %474 = vset.pattern.permute.xlu0 %v545_v3  ;;  %476 = vset.pattern.permute.xlu1 %v545_v3 }
  0x15   :  { %82 = vperm.xlu0 %474, %v456_v1   ;;  %70 = vperm.xlu1 %476, %v35_v2  }
  0x19   :  { %477 = vset.pattern.permute.xlu1 %v546_v5  ;;  %58 = vrot.lane.b32.xlu0 %v587_v4, %s547_s0 }
  0x1a   :  { %119 = vperm.xlu1 %477, %v456_v1   ;;  %478 = vset.pattern.permute.xlu0 %v546_v5 }
  0x1d   :  { %107 = vperm.xlu0 %478, %v35_v2  }
  0x1e   :  { %62 = vrot.lane.b32.xlu1 %v590_v6, %s547_s0 }
  0x1f   :  { %479 = vset.pattern.permute.xlu1 %v548_v8 }
  0x21   :  { %60 = vrot.lane.b32.xlu0 %v593_v7, %s547_s0 }
  0x22   :  { %156 = vperm.xlu1 %479, %v456_v1   ;;  %480 = vset.pattern.permute.xlu0 %v549_v9 }
  0x25   :  { %99 = vrot.lane.b32.xlu0 %v590_v6, %s550_s1 }
  0x26   :  { %56 = vrot.lane.b32.xlu1 %v596_v10, %s547_s0 }
  0x29   :  { %193 = vperm.xlu0 %480, %v456_v1  }
  0x2a   :  { %95 = vrot.lane.b32.xlu1 %v587_v4, %s550_s1 }
  0x2d   :  { %132 = vrot.lane.b32.xlu0 %v587_v4, %s551_s23 }
  0x2e   :  { %144 = vperm.xlu1 %479, %v35_v2  }
  0x31   :  { %181 = vperm.xlu0 %480, %v35_v2  }
  0x32   :  { %93 = vrot.lane.b32.xlu1 %v596_v10, %s550_s1 }
  0x35   :  { %134 = vrot.lane.b32.xlu0 %v593_v7, %s551_s23 }
  0x36   :  { %97 = vrot.lane.b32.xlu1 %v593_v7, %s550_s1 }
  0x39   :  { %173 = vrot.lane.b32.xlu0 %v590_v6, %s552_s24 }
  0x3a   :  { %136 = vrot.lane.b32.xlu1 %v590_v6, %s551_s23 }
  0x3d   :  { %171 = vrot.lane.b32.xlu0 %v593_v7, %s552_s24 }
  0x3e   :  { %130 = vrot.lane.b32.xlu1 %v596_v10, %s551_s23 }
  0x42   :  { %169 = vrot.lane.b32.xlu1 %v587_v4, %s552_s24 }
  0x46   :  { %167 = vrot.lane.b32.xlu1 %v596_v10, %s552_s24 }
  0x8b   :  { %v611_v12 = vpop.permute.xlu1 %40  ;;  %v50_v13 = vpop.permute.xlu0 %49 }
  0x8c   :  { %v641_v35 = vmul.f32 %v611_v12, %v587_v4  ;;  %v53_v36 = vmul.f32 %v50_v13, %v587_v4  ;;  %v46_v39 = vmul.f32 %v611_v12, %v590_v6  ;;  %v55_v40 = vmul.f32 %v50_v13, %v590_v6 }
  0x8d   :  { %v45_v45 = vmul.f32 %v611_v12, %v593_v7  ;;  %v54_v46 = vmul.f32 %v50_v13, %v593_v7  ;;  %v52_v50 = vmul.f32 %v50_v13, %v596_v10 }
  0x90   :  { %v83_v14 = vpop.permute.xlu0 %82  ;;  %v613_v15 = vpop.permute.xlu1 %70 }
  0x94   :  { %v59_v16 = vpop.permute.xlu0 %58 }
  0x95   :  { %v615_v17 = vpop.permute.xlu1 %119  ;;  %v66_v34 = vsel %vm64_vm0, %v59_v16, 0.0 }
  0x96   :  { %v86_v37 = vmul.f32 %v83_v14, %v66_v34  ;;  %v74_v53 = vmul.f32 %v613_v15, %v66_v34 }
  0x98   :  { %v617_v18 = vpop.permute.xlu0 %107  ;;  %v90_v54 = vadd.f32 %v86_v37, %v53_v36 }
  0x99   :  { %v63_v19 = vpop.permute.xlu1 %62 }
  0x9a   :  { %v68_v31 = vsel %vm64_vm0, %v63_v19, 0.0 }
  0x9b   :  { %v76_v41 = vmul.f32 %v613_v15, %v68_v31  ;;  %v88_v44 = vmul.f32 %v83_v14, %v68_v31 }
  0x9c   :  { %v61_v20 = vpop.permute.xlu0 %60 }
  0x9d   :  { %v619_v21 = vpop.permute.xlu1 %156  ;;  %v67_v32 = vsel %vm64_vm0, %v61_v20, 0.0  ;;  %v80_v57 = vadd.f32 %v76_v41, %v46_v39  ;;  %v92_v62 = vadd.f32 %v88_v44, %v55_v40  ;;  %v43_v44 = vmul.f32 %v611_v12, %v596_v10 }
  0x9e   :  { %v87_v42 = vmul.f32 %v83_v14, %v67_v32  ;;  %v75_v47 = vmul.f32 %v613_v15, %v67_v32 }
  0xa0   :  { %v100_v22 = vpop.permute.xlu0 %99  ;;  %v91_v58 = vadd.f32 %v87_v42, %v54_v46  ;;  %v79_v63 = vadd.f32 %v75_v47, %v45_v45 }
  0xa1   :  { %v57_v23 = vpop.permute.xlu1 %56  ;;  %v105_v38 = vsel %vm101_vm1, %v100_v22, 0.0 }
  0xa2   :  { %v113_v49 = vmul.f32 %v617_v18, %v105_v38  ;;  %v65_v51 = vsel %vm64_vm0, %v57_v23, 0.0  ;;  %v125_v55 = vmul.f32 %v615_v17, %v105_v38 }
  0xa3   :  { %v85_v0 = vmul.f32 %v83_v14, %v65_v51  ;;  %v73_v45 = vmul.f32 %v613_v15, %v65_v51 }
  0xa4   :  { %v621_v25 = vpop.permute.xlu0 %193  ;;  %v117_v3 = vadd.f32 %v113_v49, %v80_v57  ;;  %v129_v7 = vadd.f32 %v125_v55, %v92_v62  ;;  %v78_v49 = vadd.f32 %v74_v53, %v641_v35  ;;  %v212_v35 = vld [vmem:[%s721_s2] sm:$0xff]  ;;  %s554_s2 = smov [#allocation6]  }
  0xa5   :  { %v96_v26 = vpop.permute.xlu1 %95  ;;  %s444_s27 = sshll.u32 %s554_s2, 4  ;;  %s445_s27 = int_to_ptr.vmem [resolvable:$true] %s444_s27 }
  0xa6   :  { %v103_v59 = vsel %vm101_vm1, %v96_v26, 0.0  ;;  %s517_s28 = scalar_lea.vmem %s445_s27, 512  ;;  %p522_p6 = scmp.lt.s32.totalorder %s445_s27, %s445_s27 }
  0xa7   :  { %v123_v8 = vmul.f32 %v615_v17, %v103_v59  ;;  %v111_v40 = vmul.f32 %v617_v18, %v103_v59  ;;  %p518_p5 = scmp.ne.s32.totalorder %s445_s27, %s517_s28  ;;  %p523_p7 = scmp.lt.s32.totalorder %s517_s28, %s517_s28 }
  0xa8   :  { %v133_v28 = vpop.permute.xlu0 %132 }
  0xa9   :  { %v625_v29 = vpop.permute.xlu1 %144  ;;  %v140_v13 = vsel %vm138_vm2, %v133_v28, 0.0  ;;  %v115_v15 = vadd.f32 %v111_v40, %v78_v49  ;;  %p524_p8 = por %p523_p7, %p522_p6 }
  0xaa   :  { %v160_v37 = vmul.f32 %v619_v21, %v140_v13 }
  0xab   :  { %p525_p9 = pnand %p524_p8, %p518_p5 }
  0xac   :  { %v629_v30 = vpop.permute.xlu0 %181 }
  0xad   :  { %v94_v33 = vpop.permute.xlu1 %93 }
  0xae   :  { %v102_v14 = vsel %vm101_vm1, %v94_v33, 0.0  ;;  %v127_v33 = vadd.f32 %v123_v8, %v90_v54 }
  0xaf   :  { %v122_v46 = vmul.f32 %v615_v17, %v102_v14 }
  0xb0   :  { %v135_v43 = vpop.permute.xlu0 %134  ;;  %v164_v12 = vadd.f32 %v160_v37, %v127_v33 }
  0xb1   :  { %v98_v48 = vpop.permute.xlu1 %97  ;;  %v141_v1 = vsel %vm138_vm2, %v135_v43, 0.0 }
  0xb2   :  { %v104_v52 = vsel %vm101_vm1, %v98_v48, 0.0  ;;  %v161_v16 = vmul.f32 %v619_v21, %v141_v1  ;;  %v149_v32 = vmul.f32 %v625_v29, %v141_v1 }
  0xb3   :  { %v124_v56 = vmul.f32 %v615_v17, %v104_v52  ;;  %v112_v60 = vmul.f32 %v617_v18, %v104_v52  ;;  %v89_v52 = vadd.f32 %v85_v0, %v52_v50  ;;  %v148_v17 = vmul.f32 %v625_v29, %v140_v13 }
  0xb4   :  { %v174_v61 = vpop.permute.xlu0 %173  ;;  %v77_v50 = vadd.f32 %v73_v45, %v43_v44 }
  0xb5   :  { %v137_v2 = vpop.permute.xlu1 %136  ;;  %v128_v4 = vadd.f32 %v124_v56, %v91_v58  ;;  %v179_v5 = vsel %vm175_vm3, %v174_v61, 0.0  ;;  %v116_v19 = vadd.f32 %v112_v60, %v79_v63  ;;  %v110_v56 = vmul.f32 %v617_v18, %v102_v14 }
  0xb6   :  { %v142_v6 = vsel %vm138_vm2, %v137_v2, 0.0  ;;  %v199_v22 = vmul.f32 %v621_v25, %v179_v5  ;;  %v187_v38 = vmul.f32 %v629_v30, %v179_v5  ;;  %v126_v51 = vadd.f32 %v122_v46, %v89_v52 }
  0xb7   :  { %v150_v9 = vmul.f32 %v625_v29, %v142_v6  ;;  %v162_v11 = vmul.f32 %v619_v21, %v142_v6  ;;  %v165_v36 = vadd.f32 %v161_v16, %v128_v4  ;;  %v153_v41 = vadd.f32 %v149_v32, %v116_v19 }
  0xb8   :  { %v172_v20 = vpop.permute.xlu0 %171  ;;  %v114_v60 = vadd.f32 %v110_v56, %v77_v50  ;;  %v152_v0 = vadd.f32 %v148_v17, %v115_v15 }
  0xb9   :  { %v154_v23 = vadd.f32 %v150_v9, %v117_v3  ;;  %v178_v24 = vsel %vm175_vm3, %v172_v20, 0.0  ;;  %v131_v26 = vpop.permute.xlu1 %130  ;;  %v166_v31 = vadd.f32 %v162_v11, %v129_v7 }
  0xba   :  { %v186_v34 = vmul.f32 %v629_v30, %v178_v24  ;;  %v198_v28 = vmul.f32 %v621_v25, %v178_v24  ;;  %v139_v42 = vsel %vm138_vm2, %v131_v26, 0.0 }
  0xbb   :  { %v203_v39 = vadd.f32 %v199_v22, %v166_v31  ;;  %v191_v48 = vadd.f32 %v187_v38, %v154_v23  ;;  %v159_v57 = vmul.f32 %v619_v21, %v139_v42  ;;  %v147_v53 = vmul.f32 %v625_v29, %v139_v42 }
  0xbc   :  { %v202_v43 = vadd.f32 %v198_v28, %v165_v36  ;;  %v190_v54 = vadd.f32 %v186_v34, %v153_v41 }
  0xbd   :  { %324 = vmatprep.subr.mxu1 %v203_v39  ;;  %v170_v47 = vpop.permute.xlu1 %169  ;;  %v163_v63 = vadd.f32 %v159_v57, %v126_v51  ;;  %v151_v1 = vadd.f32 %v147_v53, %v114_v60 }
  0xbe   :  { %v177_v55 = vsel %vm175_vm3, %v170_v47, 0.0  ;;  %325 = vmatpush1.msra.mxu1 %v202_v43 }
  0xbf   :  { %v197_v10 = vmul.f32 %v621_v25, %v177_v55  ;;  %326 = vmatprep.subr.mxu1 %v191_v48  ;;  %v185_v21 = vmul.f32 %v629_v30, %v177_v55 }
  0xc0   :  { %327 = vmatpush1.msra.mxu1 %v190_v54 }
  0xc1   :  { %v168_v18 = vpop.permute.xlu1 %167  ;;  %v201_v58 = vadd.f32 %v197_v10, %v164_v12  ;;  %458 = vmatmul.mubr.msk.f32.vlgmr.msra.gmra.mxu1 %vm221_vm4, %v212_v35  ;;  %v189_v29 = vadd.f32 %v185_v21, %v152_v0 }
  0xc2   :  { %v176_v59 = vsel %vm175_vm3, %v168_v18, 0.0 }
  0xc3   :  { %v184_v61 = vmul.f32 %v629_v30, %v176_v59  ;;  %v196_v62 = vmul.f32 %v621_v25, %v176_v59  ;;  %253 = vmatprep.subr.mxu0 %v201_v58 }
  0xc5   :  { %v200_v2 = vadd.f32 %v196_v62, %v163_v63  ;;  %v188_v3 = vadd.f32 %v184_v61, %v151_v1 }
  0xc7   :  { %254 = vmatpush1.msra.mxu0 %v200_v2 }
  0xc8   :  { %255 = vmatprep.subr.mxu0 %v189_v29 }
  0xc9   :  { %256 = vmatpush1.msra.mxu0 %v188_v3 }
  0xca   :  { %457 = vmatmul.mubr.msk.f32.vlgmr.msra.gmra.mxu0 %vm221_vm4, %v212_v35 }
 0x181   :  { %v362_v4 = vpop.f32.mrf.mxu1 }
 0x183   :  { %v364_v6 = vpop.f32.mrf.mxu1 }
 0x18a   :  { %v291_v27 = vpop.f32.mrf.mxu0 }
 0x18b   :  { %367 = vadd.xlane.f32.xlu1 %v291_v27 }
 0x18c   :  { %v293_v5 = vpop.f32.mrf.mxu0 }
 0x18d   :  { %385 = vadd.xlane.f32.xlu0 %v293_v5 }
 0x18f   :  { %421 = vadd.xlane.f32.xlu1 %v364_v6 }
 0x191   :  { %403 = vadd.xlane.f32.xlu0 %v362_v4 }
 0x214   :  { %v368_v25 = vpop.xlane.xlu1 %367 }
 0x215   :  { %v370_v30 = vmul.f32 0.0078125, %v368_v25 }
 0x216   :  { %v386_v7 = vpop.xlane.xlu0 %385 }
 0x217   :  { %v371_v8 = vsub.f32 %v291_v27, %v370_v30  ;;  %v387_v9 = vmul.f32 0.0078125, %v386_v7 }
 0x218   :  { %v422_v11 = vpop.xlane.xlu1 %421 }
 0x219   :  { %v388_v13 = vsub.f32 %v293_v5, %v387_v9  ;;  %v423_v14 = vmul.f32 0.0078125, %v422_v11  ;;  %v372_v16 = vmul.f32 %v371_v8, %v371_v8 }
 0x21a   :  { %v404_v19 = vpop.xlane.xlu0 %403 }
 0x21b   :  { %v424_v20 = vsub.f32 %v364_v6, %v423_v14  ;;  %v405_v22 = vmul.f32 0.0078125, %v404_v19  ;;  %373 = vadd.xlane.f32.xlu0 %v372_v16  ;;  %v389_v23 = vmul.f32 %v388_v13, %v388_v13 }
 0x21d   :  { %v406_v24 = vsub.f32 %v362_v4, %v405_v22  ;;  %390 = vadd.xlane.f32.xlu1 %v389_v23  ;;  %v425_v26 = vmul.f32 %v424_v20, %v424_v20 }
 0x21f   :  { %v407_v31 = vmul.f32 %v406_v24, %v406_v24 }
 0x221   :  { %426 = vadd.xlane.f32.xlu1 %v425_v26  ;;  %408 = vadd.xlane.f32.xlu0 %v407_v31 }
 0x2a4   :  { %v374_v32 = vpop.xlane.xlu0 %373 }
 0x2a5   :  { %v375_v34 = vmul.f32 0.0078125, %v374_v32 }
 0x2a6   :  { %v391_v28 = vpop.xlane.xlu1 %390 }
 0x2a7   :  { %v376_v36 = vadd.f32 1e-05, %v375_v34  ;;  %v392_v33 = vmul.f32 0.0078125, %v391_v28 }
 0x2a9   :  { %481 = vrsqrt.f32 %v376_v36  ;;  %v393_v37 = vadd.f32 1e-05, %v392_v33 }
 0x2aa   :  { %v427_v38 = vpop.xlane.xlu1 %426  ;;  %v409_v39 = vpop.xlane.xlu0 %408 }
 0x2ab   :  { %483 = vrsqrt.f32 %v393_v37  ;;  %v428_v40 = vmul.f32 0.0078125, %v427_v38  ;;  %v410_v41 = vmul.f32 0.0078125, %v409_v39 }
 0x2ad   :  { %v429_v42 = vadd.f32 1e-05, %v428_v40  ;;  %v411_v43 = vadd.f32 1e-05, %v410_v41 }
 0x2af   :  { %485 = vrsqrt.f32 %v429_v42 }
 0x2b0   :  { %487 = vrsqrt.f32 %v411_v43 }
 0x2b6   :  { %v482_v44 = vpop.eup %481 }
 0x2b7   :  { %v378_v45 = vmul.f32 %v482_v44, %v371_v8 }
 0x2b8   :  { %v484_v46 = vpop.eup %483 }
 0x2b9   :  { %v380_v47 = vmul.f32 0.70710677, %v378_v45  ;;  %v395_v48 = vmul.f32 %v484_v46, %v388_v13  ;;  %v379_v15 = vmul.f32 0.5, %v378_v45 }
 0x2bb   :  { %489 = verf.f32 %v380_v47  ;;  %v397_v49 = vmul.f32 0.70710677, %v395_v48  ;;  %v396_v51 = vmul.f32 0.5, %v395_v48 }
 0x2bc   :  { %v486_v52 = vpop.eup %485 }
 0x2bd   :  { %v488_v54 = vpop.eup %487  ;;  %491 = verf.f32 %v397_v49  ;;  %v431_v55 = vmul.f32 %v486_v52, %v424_v20 }
 0x2be   :  { %v413_v56 = vmul.f32 %v488_v54, %v406_v24 }
 0x2bf   :  { %v433_v57 = vmul.f32 0.70710677, %v431_v55  ;;  %v432_v59 = vmul.f32 0.5, %v431_v55 }
 0x2c0   :  { %v415_v10 = vmul.f32 0.70710677, %v413_v56  ;;  %v414_v61 = vmul.f32 0.5, %v413_v56 }
 0x2c1   :  { %493 = verf.f32 %v433_v57 }
 0x2c2   :  { %495 = verf.f32 %v415_v10 }
 0x2c8   :  { %v490_v12 = vpop.eup %489 }
 0x2c9   :  { %v382_v17 = vadd.f32 1.0, %v490_v12 }
 0x2ca   :  { %v492_v35 = vpop.eup %491 }
 0x2cb   :  { %v383_v50 = vmul.f32 %v382_v17, %v379_v15  ;;  %v399_v53 = vadd.f32 1.0, %v492_v35 }
 0x2cd   :  { %384 = vst [vmem:[#allocation6] sm:$0xff] %v383_v50  ;;  %v400_v18 = vmul.f32 %v399_v53, %v396_v51 }
 0x2ce   :  { %v494_v58 = vpop.eup %493 }
 0x2cf   :  { %v496_v21 = vpop.eup %495  ;;  %402 = vst [vmem:[#allocation6 + $0x8] sm:$0xff] %v400_v18  ;;  %v435_v60 = vadd.f32 1.0, %v494_v58 }
 0x2d0   :  { %v417_v62 = vadd.f32 1.0, %v496_v21 }
 0x2d1   :  { %v436_v63 = vmul.f32 %v435_v60, %v432_v59 }
 0x2d2   :  { %v418_v0 = vmul.f32 %v417_v62, %v414_v61 }
 0x2d3   :  { %438 = vst [vmem:[#allocation6 + $0x18] sm:$0xff] %v436_v63 }
 0x2d4   :  { %420 = vst [vmem:[#allocation6 + $0x10] sm:$0xff] %v418_v0 }
 0x2d5   :  { %528 = shalt.err (!%p525_p9)
}
 0x2d6   :  { %450 = dma.vmem_to_hbm [thread:$0]  %s445_s27, 512, %s722_s3, [#allocation5], %s542_s15, %s542_s15, %s543_s16  }
 0x2d7   :  { %539 = dma.done.wait [#allocation5], 512  }
 0x2d8   :  { %540 = vsyncadd [#allocation5], 4294966784 }
 0x2d9   :  { %454 = vsyncpa [#allocation4], 1 }
 0x2da   :  { %455 = vsyncpa [#allocation5], 1 }

</bundles_post_ra>
